<compile_context>
chip_gen: v5e
topology: v5e:2x2
jax: 0.10.0
libtpu: 0.0.40
codegen_flags: <defaults>
</compile_context>

<pallas_src>
import functools

import jax
import jax.numpy as jnp
from jax.experimental import pallas as pl
from jax.experimental.pallas import tpu as pltpu

LANES = 128          # vreg lane width / MXU column width
MAX_TILE_M = 1024    # batch-tile cap (rows); ~86% of HBM roofline measured


def _round_up(n, m):
    return ((n + m - 1) // m) * m


def _pad2d(a, rows, cols):
    return jnp.pad(a, ((0, rows - a.shape[0]), (0, cols - a.shape[1])))


def _epilogue_dtype():
    """bf16 bias/ReLU epilogue on v6e/v7x (native bf16 VPU); f32 elsewhere."""
    try:
        kind = jax.devices()[0].device_kind.lower()
    except Exception:  # pragma: no cover - defensive
        kind = ""
    if ("v6" in kind) or ("v7" in kind):
        return jnp.bfloat16
    return jnp.float32


def make_chatbot_kernel(compute_dtype):
    def chatbot_kernel(x_ref,
                       w1_ref, b1_ref,
                       w2_ref, b2_ref,
                       w3_ref, b3_ref,
                       w4_ref, b4_ref,
                       o_ref):
        # x arrives as bf16; ReLU directly on the bf16 tile (commutes with the
        # bf16 round, so semantics match relu-then-cast).
        h = jnp.maximum(x_ref[...], 0)

        def layer(h_bf16, w_ref, b_ref, relu):
            # MXU matmul, f32 accumulation; bias/ReLU epilogue in compute_dtype.
            acc = jnp.dot(h_bf16, w_ref[...], preferred_element_type=jnp.float32)
            acc = acc.astype(compute_dtype) + b_ref[...]
            if relu:
                acc = jnp.maximum(acc, 0)
            return acc

        h = layer(h, w1_ref, b1_ref, True).astype(jnp.bfloat16)
        h = layer(h, w2_ref, b2_ref, True).astype(jnp.bfloat16)
        h = layer(h, w3_ref, b3_ref, True).astype(jnp.bfloat16)
        h = layer(h, w4_ref, b4_ref, False)
        o_ref[...] = h.astype(o_ref.dtype)

    return chatbot_kernel


def chatbot_forward(x, params):
    """x: (B, inp_size) f32.  params: w1..w4 as (in, out), b1..b4 as (1, out)."""
    B, inp_size = x.shape
    out_size = params["w4"].shape[1]
    compute_dtype = _epilogue_dtype()

    in_pad = _round_up(inp_size, LANES)
    out_pad = _round_up(out_size, LANES)

    # Batch tiling: multiple of 8 sublanes, up to MAX_TILE_M rows.  For large
    # batches keep >= 2 grid steps so v7x megacore can use both TensorCores.
    b8 = _round_up(B, 8)
    if b8 <= 512:
        tile_m = b8
    else:
        tile_m = min(MAX_TILE_M, _round_up((b8 + 1) // 2, 8))
    b_pad = _round_up(b8, tile_m)

    # bf16 activation stream in HBM (halves the dominant DMA traffic).
    x_p = _pad2d(x, b_pad, in_pad).astype(jnp.bfloat16)

    # Zero-pad to lane-dense 128-wide layers; padded lanes stay exactly 0
    # through matmul + 0-bias + ReLU, so semantics are preserved.
    w1 = _pad2d(params["w1"], in_pad, LANES).astype(jnp.bfloat16)
    w2 = _pad2d(params["w2"], LANES, LANES).astype(jnp.bfloat16)
    w3 = _pad2d(params["w3"], LANES, LANES).astype(jnp.bfloat16)
    w4 = _pad2d(params["w4"], LANES, out_pad).astype(jnp.bfloat16)
    b1 = _pad2d(params["b1"], 1, LANES).astype(compute_dtype)
    b2 = _pad2d(params["b2"], 1, LANES).astype(compute_dtype)
    b3 = _pad2d(params["b3"], 1, LANES).astype(compute_dtype)
    b4 = _pad2d(params["b4"], 1, out_pad).astype(compute_dtype)

    grid = (b_pad // tile_m,)

    # Activation/output tiles move with the batch grid index; weights & biases
    # use a constant index_map so they remain resident in VMEM across steps.
    # (Constant-index blocks are double-buffered by default; their footprint
    # here is < 1 MiB so we leave the default buffering.)
    x_spec = pl.BlockSpec((tile_m, in_pad), lambda i: (i, 0))
    o_spec = pl.BlockSpec((tile_m, out_pad), lambda i: (i, 0))
    in_specs = [
        x_spec,
        pl.BlockSpec((in_pad, LANES), lambda i: (0, 0)),   # w1
        pl.BlockSpec((1, LANES), lambda i: (0, 0)),        # b1
        pl.BlockSpec((LANES, LANES), lambda i: (0, 0)),    # w2
        pl.BlockSpec((1, LANES), lambda i: (0, 0)),        # b2
        pl.BlockSpec((LANES, LANES), lambda i: (0, 0)),    # w3
        pl.BlockSpec((1, LANES), lambda i: (0, 0)),        # b3
        pl.BlockSpec((LANES, out_pad), lambda i: (0, 0)),  # w4
        pl.BlockSpec((1, out_pad), lambda i: (0, 0)),      # b4
    ]

    # Explicit VMEM budget so large tiles never overshoot v7x's smaller VMEM.
    x_tile_bytes = tile_m * in_pad * 2
    o_tile_bytes = tile_m * out_pad * 2
    w_bytes = (in_pad * LANES + 2 * LANES * LANES + LANES * out_pad) * 2
    inter_bytes = 4 * tile_m * LANES * 4            # f32 intermediates headroom
    needed = 2 * (x_tile_bytes + o_tile_bytes + w_bytes) + inter_bytes + (4 << 20)
    vmem_limit = int(min(64 << 20, max(32 << 20, needed)))

    flops = 2 * B * (inp_size * 120 + 120 * 64 + 64 * 36 + 36 * out_size)
    bytes_accessed = (b_pad * in_pad * 2            # x stream (bf16)
                      + b_pad * out_pad * 2         # output stream (bf16)
                      + (in_pad * LANES + 2 * LANES * LANES
                         + LANES * out_pad) * 2     # weights (read once)
                      + (3 * LANES + out_pad) * 4)  # biases

    out = pl.pallas_call(
        make_chatbot_kernel(compute_dtype),
        out_shape=jax.ShapeDtypeStruct((b_pad, out_pad), jnp.bfloat16),
        grid=grid,
        in_specs=in_specs,
        out_specs=o_spec,
        compiler_params=pltpu.CompilerParams(
            dimension_semantics=("parallel",),       # shard batch across TCs (v7x)
            vmem_limit_bytes=vmem_limit),
        cost_estimate=pl.CostEstimate(
            flops=flops, transcendentals=0, bytes_accessed=bytes_accessed),
    )(x_p, w1, b1, w2, b2, w3, b3, w4, b4)

    # Slice padding away; upcast for an f32 interface matching the nn.Module.
    return out[:B, :out_size].astype(jnp.float32)


# jit the whole wrapper so padding/casting fuses and per-call overhead is
# amortized across invocations.
chatbot_forward_jit = jax.jit(chatbot_forward)


def init_params(key, inp_size, out_size):
    """Deterministic synthetic init (nn.Linear shapes, pre-transposed to (in,out))."""
    sizes = [(inp_size, 120), (120, 64), (64, 36), (36, out_size)]
    params = {}
    for i, (fan_in, fan_out) in enumerate(sizes, start=1):
        key, kw, kb = jax.random.split(key, 3)
        bound = 1.0 / jnp.sqrt(fan_in)
        params[f"w{i}"] = jax.random.uniform(
            kw, (fan_in, fan_out), jnp.float32, -bound, bound)
        params[f"b{i}"] = jax.random.uniform(
            kb, (1, fan_out), jnp.float32, -bound, bound)
    return params


def reference_forward_f32(x, params):
    h = x
    for i in range(1, 5):
        h = jnp.maximum(h, 0.0)
        h = h @ params[f"w{i}"] + params[f"b{i}"]
    return h


def reference_forward_matched(x, params, compute_dtype):
    """Plain-JAX reference matching the kernel's numerics exactly:
    bf16 input / matmul operands, f32 MXU accumulation, compute_dtype
    bias+ReLU epilogue, bf16 HBM output."""
    h = jnp.maximum(x.astype(jnp.bfloat16), 0)
    for i in range(1, 5):
        w = params[f"w{i}"].astype(jnp.bfloat16)
        b = params[f"b{i}"].astype(compute_dtype)
        acc = jnp.dot(h, w, preferred_element_type=jnp.float32)
        acc = acc.astype(compute_dtype) + b
        if i < 4:
            h = jnp.maximum(acc, 0).astype(jnp.bfloat16)
        else:
            h = acc
    return h.astype(jnp.bfloat16).astype(jnp.float32)


def _check(batch, inp_size, out_size, seed):
    key = jax.random.PRNGKey(seed)
    kx, kp = jax.random.split(key)
    x = jax.random.normal(kx, (batch, inp_size), jnp.float32)
    params = init_params(kp, inp_size, out_size)

    out = chatbot_forward_jit(x, params)
    out = jax.block_until_ready(out)
    assert out.shape == (batch, out_size)

    ref_matched = reference_forward_matched(x, params, _epilogue_dtype())
    ref_f32 = reference_forward_f32(x, params)
    assert jnp.allclose(out, ref_matched, atol=1e-2, rtol=1e-2), \
        "mismatch vs numerics-matched JAX reference"
    assert jnp.allclose(out, ref_f32, atol=7e-2, rtol=7e-2), \
        "mismatch vs f32 JAX reference"


if __name__ == "__main__":
    # Small case (single grid step, heavy feature padding).
    _check(batch=2, inp_size=32, out_size=8, seed=0)
    # Larger batch exercises the multi-step grid + row padding path.
    _check(batch=600, inp_size=32, out_size=8, seed=1)
    print("KERNEL_OK")
</pallas_src>

<mosaic_0001>
module attributes {stable_mosaic.version = 11 : i64} {
  func.func @chatbot_kernel(%arg0: i32, %arg1: memref<8x128xbf16, #tpu.memory_space<vmem>>, %arg2: memref<128x128xbf16, #tpu.memory_space<vmem>>, %arg3: memref<1x128xf32, #tpu.memory_space<vmem>>, %arg4: memref<128x128xbf16, #tpu.memory_space<vmem>>, %arg5: memref<1x128xf32, #tpu.memory_space<vmem>>, %arg6: memref<128x128xbf16, #tpu.memory_space<vmem>>, %arg7: memref<1x128xf32, #tpu.memory_space<vmem>>, %arg8: memref<128x128xbf16, #tpu.memory_space<vmem>>, %arg9: memref<1x128xf32, #tpu.memory_space<vmem>>, %arg10: memref<8x128xbf16, #tpu.memory_space<vmem>>) attributes {dimension_semantics = [#tpu.dimension_semantics<parallel>], iteration_bounds = array<i64: 1>, scalar_prefetch = 0 : i64, scratch_operands = 0 : i64, tpu.core_type = #tpu.core_type<tc>, window_params = [{transform_indices = @transform_0, window_bounds = array<i64: 8, 128>}, {pipeline_mode = #tpu.pipeline_mode<synchronous>, transform_indices = @transform_1, window_bounds = array<i64: 128, 128>}, {pipeline_mode = #tpu.pipeline_mode<synchronous>, transform_indices = @transform_2, window_bounds = array<i64: 1, 128>}, {pipeline_mode = #tpu.pipeline_mode<synchronous>, transform_indices = @transform_3, window_bounds = array<i64: 128, 128>}, {pipeline_mode = #tpu.pipeline_mode<synchronous>, transform_indices = @transform_4, window_bounds = array<i64: 1, 128>}, {pipeline_mode = #tpu.pipeline_mode<synchronous>, transform_indices = @transform_5, window_bounds = array<i64: 128, 128>}, {pipeline_mode = #tpu.pipeline_mode<synchronous>, transform_indices = @transform_6, window_bounds = array<i64: 1, 128>}, {pipeline_mode = #tpu.pipeline_mode<synchronous>, transform_indices = @transform_7, window_bounds = array<i64: 128, 128>}, {pipeline_mode = #tpu.pipeline_mode<synchronous>, transform_indices = @transform_8, window_bounds = array<i64: 1, 128>}, {transform_indices = @transform_9, window_bounds = array<i64: 8, 128>}]} {
    %c0 = arith.constant 0 : index
    %c0_0 = arith.constant 0 : index
    %0 = vector.load %arg1[%c0, %c0_0] : memref<8x128xbf16, #tpu.memory_space<vmem>>, vector<8x128xbf16>
    %cst = arith.constant 0.000000e+00 : bf16
    %1 = vector.broadcast %cst : bf16 to vector<8x128xbf16>
    %2 = arith.maximumf %0, %1 : vector<8x128xbf16>
    %c0_1 = arith.constant 0 : index
    %c0_2 = arith.constant 0 : index
    %3 = vector.load %arg2[%c0_1, %c0_2] : memref<128x128xbf16, #tpu.memory_space<vmem>>, vector<128x128xbf16>
    %cst_3 = arith.constant dense<0.000000e+00> : vector<8x128xf32>
    %4 = tpu.matmul %2, %3, %cst_3 {dimension_numbers = #tpu.dot_dimension_numbers<[1], [0], [0], [1], [0, 0, 1, 1], [], []>} : vector<8x128xbf16>, vector<128x128xbf16>, vector<8x128xf32> -> vector<8x128xf32>
    %c0_4 = arith.constant 0 : index
    %c0_5 = arith.constant 0 : index
    %5 = vector.load %arg3[%c0_4, %c0_5] : memref<1x128xf32, #tpu.memory_space<vmem>>, vector<1x128xf32>
    %6 = vector.broadcast %5 : vector<1x128xf32> to vector<8x128xf32>
    %7 = arith.addf %4, %6 : vector<8x128xf32>
    %cst_6 = arith.constant 0.000000e+00 : f32
    %8 = vector.broadcast %cst_6 : f32 to vector<8x128xf32>
    %9 = arith.maximumf %7, %8 : vector<8x128xf32>
    %10 = arith.truncf %9 : vector<8x128xf32> to vector<8x128xbf16>
    %c0_7 = arith.constant 0 : index
    %c0_8 = arith.constant 0 : index
    %11 = vector.load %arg4[%c0_7, %c0_8] : memref<128x128xbf16, #tpu.memory_space<vmem>>, vector<128x128xbf16>
    %cst_9 = arith.constant dense<0.000000e+00> : vector<8x128xf32>
    %12 = tpu.matmul %10, %11, %cst_9 {dimension_numbers = #tpu.dot_dimension_numbers<[1], [0], [0], [1], [0, 0, 1, 1], [], []>} : vector<8x128xbf16>, vector<128x128xbf16>, vector<8x128xf32> -> vector<8x128xf32>
    %c0_10 = arith.constant 0 : index
    %c0_11 = arith.constant 0 : index
    %13 = vector.load %arg5[%c0_10, %c0_11] : memref<1x128xf32, #tpu.memory_space<vmem>>, vector<1x128xf32>
    %14 = vector.broadcast %13 : vector<1x128xf32> to vector<8x128xf32>
    %15 = arith.addf %12, %14 : vector<8x128xf32>
    %cst_12 = arith.constant 0.000000e+00 : f32
    %16 = vector.broadcast %cst_12 : f32 to vector<8x128xf32>
    %17 = arith.maximumf %15, %16 : vector<8x128xf32>
    %18 = arith.truncf %17 : vector<8x128xf32> to vector<8x128xbf16>
    %c0_13 = arith.constant 0 : index
    %c0_14 = arith.constant 0 : index
    %19 = vector.load %arg6[%c0_13, %c0_14] : memref<128x128xbf16, #tpu.memory_space<vmem>>, vector<128x128xbf16>
    %cst_15 = arith.constant dense<0.000000e+00> : vector<8x128xf32>
    %20 = tpu.matmul %18, %19, %cst_15 {dimension_numbers = #tpu.dot_dimension_numbers<[1], [0], [0], [1], [0, 0, 1, 1], [], []>} : vector<8x128xbf16>, vector<128x128xbf16>, vector<8x128xf32> -> vector<8x128xf32>
    %c0_16 = arith.constant 0 : index
    %c0_17 = arith.constant 0 : index
    %21 = vector.load %arg7[%c0_16, %c0_17] : memref<1x128xf32, #tpu.memory_space<vmem>>, vector<1x128xf32>
    %22 = vector.broadcast %21 : vector<1x128xf32> to vector<8x128xf32>
    %23 = arith.addf %20, %22 : vector<8x128xf32>
    %cst_18 = arith.constant 0.000000e+00 : f32
    %24 = vector.broadcast %cst_18 : f32 to vector<8x128xf32>
    %25 = arith.maximumf %23, %24 : vector<8x128xf32>
    %26 = arith.truncf %25 : vector<8x128xf32> to vector<8x128xbf16>
    %c0_19 = arith.constant 0 : index
    %c0_20 = arith.constant 0 : index
    %27 = vector.load %arg8[%c0_19, %c0_20] : memref<128x128xbf16, #tpu.memory_space<vmem>>, vector<128x128xbf16>
    %cst_21 = arith.constant dense<0.000000e+00> : vector<8x128xf32>
    %28 = tpu.matmul %26, %27, %cst_21 {dimension_numbers = #tpu.dot_dimension_numbers<[1], [0], [0], [1], [0, 0, 1, 1], [], []>} : vector<8x128xbf16>, vector<128x128xbf16>, vector<8x128xf32> -> vector<8x128xf32>
    %c0_22 = arith.constant 0 : index
    %c0_23 = arith.constant 0 : index
    %29 = vector.load %arg9[%c0_22, %c0_23] : memref<1x128xf32, #tpu.memory_space<vmem>>, vector<1x128xf32>
    %30 = vector.broadcast %29 : vector<1x128xf32> to vector<8x128xf32>
    %31 = arith.addf %28, %30 : vector<8x128xf32>
    %32 = arith.truncf %31 : vector<8x128xf32> to vector<8x128xbf16>
    %c0_24 = arith.constant 0 : index
    %c0_25 = arith.constant 0 : index
    %33 = vector.load %arg10[%c0_24, %c0_25] : memref<8x128xbf16, #tpu.memory_space<vmem>>, vector<8x128xbf16>
    tpu.vector_store %arg10[%c0_24, %c0_25], %32 {strides = array<i32>} : memref<8x128xbf16, #tpu.memory_space<vmem>>, vector<8x128xbf16>,
    return
  }
  func.func @transform_0(%arg0: i32) -> (i32, i32) {
    %c0_i32 = arith.constant 0 : i32
    %c0_i32_0 = arith.constant 0 : i32
    return %arg0, %c0_i32 : i32, i32
  }
  func.func @transform_1(%arg0: i32) -> (i32, i32) {
    %c0_i32 = arith.constant 0 : i32
    %c0_i32_0 = arith.constant 0 : i32
    %c0_i32_1 = arith.constant 0 : i32
    return %c0_i32, %c0_i32_0 : i32, i32
  }
  func.func @transform_2(%arg0: i32) -> (i32, i32) {
    %c0_i32 = arith.constant 0 : i32
    %c0_i32_0 = arith.constant 0 : i32
    %c0_i32_1 = arith.constant 0 : i32
    return %c0_i32, %c0_i32_0 : i32, i32
  }
  func.func @transform_3(%arg0: i32) -> (i32, i32) {
    %c0_i32 = arith.constant 0 : i32
    %c0_i32_0 = arith.constant 0 : i32
    %c0_i32_1 = arith.constant 0 : i32
    return %c0_i32, %c0_i32_0 : i32, i32
  }
  func.func @transform_4(%arg0: i32) -> (i32, i32) {
    %c0_i32 = arith.constant 0 : i32
    %c0_i32_0 = arith.constant 0 : i32
    %c0_i32_1 = arith.constant 0 : i32
    return %c0_i32, %c0_i32_0 : i32, i32
  }
  func.func @transform_5(%arg0: i32) -> (i32, i32) {
    %c0_i32 = arith.constant 0 : i32
    %c0_i32_0 = arith.constant 0 : i32
    %c0_i32_1 = arith.constant 0 : i32
    return %c0_i32, %c0_i32_0 : i32, i32
  }
  func.func @transform_6(%arg0: i32) -> (i32, i32) {
    %c0_i32 = arith.constant 0 : i32
    %c0_i32_0 = arith.constant 0 : i32
    %c0_i32_1 = arith.constant 0 : i32
    return %c0_i32, %c0_i32_0 : i32, i32
  }
  func.func @transform_7(%arg0: i32) -> (i32, i32) {
    %c0_i32 = arith.constant 0 : i32
    %c0_i32_0 = arith.constant 0 : i32
    %c0_i32_1 = arith.constant 0 : i32
    return %c0_i32, %c0_i32_0 : i32, i32
  }
  func.func @transform_8(%arg0: i32) -> (i32, i32) {
    %c0_i32 = arith.constant 0 : i32
    %c0_i32_0 = arith.constant 0 : i32
    %c0_i32_1 = arith.constant 0 : i32
    return %c0_i32, %c0_i32_0 : i32, i32
  }
  func.func @transform_9(%arg0: i32) -> (i32, i32) {
    %c0_i32 = arith.constant 0 : i32
    %c0_i32_0 = arith.constant 0 : i32
    return %arg0, %c0_i32 : i32, i32
  }
}

</mosaic_0001>

<bundles_post_ra>
// kernel: chatbot_forward.1
= control target key start
LH: loop header
LB: loop body
LE: loop exit
PB: predicated region body
PF: predicated region fallthrough
CT: control target
= control target key end

     0   :  { %s700_s1 = inlined_call_operand.vmem [shape: bf16[128,128], index: 1, kind: input, shape index: {}]   ;;  %s701_s3 = inlined_call_operand.vmem [shape: bf16[128,128], index: 3, kind: input, shape index: {}]   ;;  %s702_s2 = inlined_call_operand.vmem [shape: f32[1,128], index: 2, kind: input, shape index: {}]   ;;  %s703_s0 = inlined_call_operand.vmem [shape: bf16[8,128], index: 0, kind: input, shape index: {}]   ;;  %s704_s4 = inlined_call_operand.vmem [shape: f32[1,128], index: 4, kind: input, shape index: {}]   ;;  %s705_s5 = inlined_call_operand.vmem [shape: bf16[128,128], index: 5, kind: input, shape index: {}]   ;;  %s706_s6 = inlined_call_operand.vmem [shape: f32[1,128], index: 6, kind: input, shape index: {}]   ;;  %s707_s7 = inlined_call_operand.vmem [shape: bf16[128,128], index: 7, kind: input, shape index: {}]   ;;  %s708_s8 = inlined_call_operand.vmem [shape: f32[1,128], index: 8, kind: input, shape index: {}]   ;;  %s709_s9 = inlined_call_operand.vmem [shape: bf16[8,128], index: 9, kind: output, shape index: {}]  }
   0x1   :  { %v507_v0 = vld [vmem:[%s700_s1 + $0x38] sm:$0xff]  ;;  %v506_v1 = vld [vmem:[%s700_s1 + $0x30] sm:$0xff]  ;;  %v505_v4 = vld [vmem:[%s700_s1 + $0x28] sm:$0xff] }
   0x2   :  { %104 = vmatpush.bf16.msra.mxu0 %v507_v0  ;;  %v515_v2 = vld [vmem:[%s701_s3 + $0x38] sm:$0xff]  ;;  %v514_v3 = vld [vmem:[%s701_s3 + $0x30] sm:$0xff]  ;;  %v513_v5 = vld [vmem:[%s701_s3 + $0x28] sm:$0xff] }
   0x3   :  { %187 = vmatpush.bf16.msra.mxu1 %v515_v2  ;;  %v504_v6 = vld [vmem:[%s700_s1 + $0x20] sm:$0xff]  ;;  %v503_v8 = vld [vmem:[%s700_s1 + $0x18] sm:$0xff]  ;;  %v502_v10 = vld [vmem:[%s700_s1 + $0x10] sm:$0xff] }
   0x4   :  { %v512_v7 = vld [vmem:[%s701_s3 + $0x20] sm:$0xff]  ;;  %v511_v9 = vld [vmem:[%s701_s3 + $0x18] sm:$0xff]  ;;  %v510_v13 = vld [vmem:[%s701_s3 + $0x10] sm:$0xff] }
   0x5   :  { %v32_v11 = vld [vmem:[%s703_s0] sm:$0xf]  ;;  %v501_v14 = vld [vmem:[%s700_s1 + $0x8] sm:$0xff]  ;;  %v523_v20 = vld [vmem:[%s705_s5 + $0x38] sm:$0xff] }
   0x6   :  { %105 = vmatpush.bf16.msra.mxu0 %v506_v1  ;;  %v33_v12 = vunpack.c.l.bf16 %v32_v11  ;;  %v500_v16 = vld [vmem:[%s700_s1] sm:$0xff]  ;;  %v509_v18 = vld [vmem:[%s701_s3 + $0x8] sm:$0xff]  ;;  %270 = vmatpush.bf16.msra.mxu2 %v523_v20  ;;  %v522_v21 = vld [vmem:[%s705_s5 + $0x30] sm:$0xff] }
   0x7   :  { %188 = vmatpush.bf16.msra.mxu1 %v514_v3  ;;  %v508_v19 = vld [vmem:[%s701_s3] sm:$0xff]  ;;  %v521_v22 = vld [vmem:[%s705_s5 + $0x28] sm:$0xff]  ;;  %v519_v24 = vld [vmem:[%s705_s5 + $0x18] sm:$0xff] }
   0x8   :  { %v34_v15 = vmax.f32 %v33_v12, 0.0  ;;  %v520_v23 = vld [vmem:[%s705_s5 + $0x20] sm:$0xff]  ;;  %v518_v25 = vld [vmem:[%s705_s5 + $0x10] sm:$0xff]  ;;  %v517_v32 = vld [vmem:[%s705_s5 + $0x8] sm:$0xff] }
   0x9   :  { %v532_v26 = vld [vmem:[%s702_s2] ss:$0 sm:$0xff]  ;;  %v531_v34 = vld [vmem:[%s707_s7 + $0x38] sm:$0xff]  ;;  %v530_v35 = vld [vmem:[%s707_s7 + $0x30] sm:$0xff] }
   0xa   :  { %106 = vmatpush.bf16.msra.mxu0 %v505_v4  ;;  %v35_v17 = vpack.c.bf16 %v34_v15, %v34_v15  ;;  %271 = vmatpush.bf16.msra.mxu2 %v522_v21  ;;  %v516_v33 = vld [vmem:[%s705_s5] sm:$0xff]  ;;  %v529_v36 = vld [vmem:[%s707_s7 + $0x28] sm:$0xff]  ;;  %v527_v38 = vld [vmem:[%s707_s7 + $0x18] sm:$0xff] }
   0xb   :  { %189 = vmatpush.bf16.msra.mxu1 %v513_v5  ;;  %353 = vmatpush.bf16.msra.mxu3 %v531_v34  ;;  %v528_v37 = vld [vmem:[%s707_s7 + $0x20] sm:$0xff]  ;;  %v526_v39 = vld [vmem:[%s707_s7 + $0x10] sm:$0xff]  ;;  %v525_v46 = vld [vmem:[%s707_s7 + $0x8] sm:$0xff] }
   0xc   :  { %v533_v40 = vld [vmem:[%s704_s4] ss:$0 sm:$0xff] }
   0xd   :  { %v524_v47 = vld [vmem:[%s707_s7] sm:$0xff] }
   0xe   :  { %107 = vmatpush.bf16.msra.mxu0 %v504_v6  ;;  %272 = vmatpush.bf16.msra.mxu2 %v521_v22  ;;  %v534_v48 = vld [vmem:[%s706_s6] ss:$0 sm:$0xff] }
   0xf   :  { %190 = vmatpush.bf16.msra.mxu1 %v512_v7  ;;  %354 = vmatpush.bf16.msra.mxu3 %v530_v35  ;;  %v535_v54 = vld [vmem:[%s708_s8] ss:$0 sm:$0xff] }
  0x12   :  { %108 = vmatpush.bf16.msra.mxu0 %v503_v8  ;;  %273 = vmatpush.bf16.msra.mxu2 %v520_v23 }
  0x13   :  { %191 = vmatpush.bf16.msra.mxu1 %v511_v9  ;;  %355 = vmatpush.bf16.msra.mxu3 %v529_v36 }
  0x16   :  { %109 = vmatpush.bf16.msra.mxu0 %v502_v10  ;;  %274 = vmatpush.bf16.msra.mxu2 %v519_v24 }
  0x17   :  { %192 = vmatpush.bf16.msra.mxu1 %v510_v13  ;;  %356 = vmatpush.bf16.msra.mxu3 %v528_v37 }
  0x1a   :  { %110 = vmatpush.bf16.msra.mxu0 %v501_v14  ;;  %275 = vmatpush.bf16.msra.mxu2 %v518_v25 }
  0x1b   :  { %193 = vmatpush.bf16.msra.mxu1 %v509_v18  ;;  %357 = vmatpush.bf16.msra.mxu3 %v527_v38 }
  0x1e   :  { %111 = vmatpush.bf16.msra.mxu0 %v500_v16  ;;  %276 = vmatpush.bf16.msra.mxu2 %v517_v32 }
  0x1f   :  { %194 = vmatpush.bf16.msra.mxu1 %v508_v19  ;;  %358 = vmatpush.bf16.msra.mxu3 %v526_v39 }
  0x21   :  { %112 = vmatmul.bf16.vlgmr.msra.gmra.mxu0 %v35_v17 }
  0x22   :  { %277 = vmatpush.bf16.msra.mxu2 %v516_v33 }
  0x23   :  { %359 = vmatpush.bf16.msra.mxu3 %v525_v46 }
  0x27   :  { %360 = vmatpush.bf16.msra.mxu3 %v524_v47 }
  0x9e   :  { %v113_v27 = vpop.f32.mrf.mxu0 }
  0x9f   :  { %v114_v28 = vadd.f32 %v532_v26, %v113_v27 }
  0xa1   :  { %v117_v29 = vmax.f32 %v114_v28, 0.0 }
  0xa3   :  { %v118_v30 = vpack.c.bf16 %v117_v29, %v117_v29 }
  0xa5   :  { %195 = vmatmul.bf16.vlgmr.msra.gmra.mxu1 %v118_v30 }
  0xa6   :  { %v115_v31 = vpop.f32.mrf.mxu0 }
 0x122   :  { %v196_v41 = vpop.f32.mrf.mxu1 }
 0x123   :  { %v197_v42 = vadd.f32 %v533_v40, %v196_v41 }
 0x125   :  { %v200_v43 = vmax.f32 %v197_v42, 0.0 }
 0x127   :  { %v201_v44 = vpack.c.bf16 %v200_v43, %v200_v43 }
 0x129   :  { %278 = vmatmul.bf16.vlgmr.msra.gmra.mxu2 %v201_v44 }
 0x12a   :  { %v198_v45 = vpop.f32.mrf.mxu1 }
 0x1ac   :  { %v279_v49 = vpop.f32.mrf.mxu2 }
 0x1ad   :  { %v280_v50 = vadd.f32 %v534_v48, %v279_v49 }
 0x1af   :  { %v283_v51 = vmax.f32 %v280_v50, 0.0 }
 0x1b1   :  { %v284_v52 = vpack.c.bf16 %v283_v51, %v283_v51 }
 0x1b3   :  { %361 = vmatmul.bf16.vlgmr.msra.gmra.mxu3 %v284_v52 }
 0x1b4   :  { %v281_v53 = vpop.f32.mrf.mxu2 }
 0x236   :  { %v362_v55 = vpop.f32.mrf.mxu3 }
 0x237   :  { %v363_v56 = vadd.f32 %v535_v54, %v362_v55 }
 0x239   :  { %v366_v57 = vpack.c.bf16 %v363_v56, %v363_v56 }
 0x23b   :  { %367 = vst [vmem:[%s709_s9] sm:$0xf] %v366_v57 }
 0x23e   :  { %v364_v58 = vpop.f32.mrf.mxu3 }

</bundles_post_ra>
